<compile_context>
chip_gen: v5e
topology: v5e:2x2
jax: 0.10.0
libtpu: 0.0.40
codegen_flags: <defaults>
</compile_context>

<pallas_src>
import math
import functools

import jax
import jax.numpy as jnp
import numpy as np
from jax.experimental import pallas as pl
from jax.experimental.pallas import tpu as pltpu


_LANES = 512                     # lane width of the dense slab (multiple of 128)
_MAX_BLOCK_ROWS = 512            # 512 x 512 x 4B = 1 MiB per input block
_VMEM_LIMIT_BYTES = 32 * 1024 * 1024  # safe on v5e/v6e (128 MiB phys) and v7x (64 MiB phys)


# ---------------------------------------------------------------------------
# Small host-side helpers (static Python ints only)
# ---------------------------------------------------------------------------
def _cdiv(a, b):
    return -(-a // b)


def _round_up(a, b):
    return _cdiv(a, b) * b


def _slab_geometry(n_elems, lanes=_LANES, max_block_rows=_MAX_BLOCK_ROWS):
    """Returns (rows_padded, block_rows) for a 2-core x pipelined row grid."""
    rows = max(1, _cdiv(n_elems, lanes))
    block_rows = min(max_block_rows, _round_up(_cdiv(rows, 2), 8))
    rows_padded = _round_up(rows, 2 * block_rows)
    return rows_padded, block_rows


def _build_slab(parts, n_padded, pad_value, dtype):
    """Concat `parts` (+ neutral pad) into one flat slab with a single copy."""
    n = sum(int(p.shape[0]) for p in parts)
    pad = n_padded - n
    pieces = [p.astype(dtype) for p in parts]
    if pad:
        pieces.append(jnp.full((pad,), pad_value, dtype=dtype))
    flat = jnp.concatenate(pieces) if len(pieces) > 1 else pieces[0]
    return flat


# ---------------------------------------------------------------------------
# Kernels
# ---------------------------------------------------------------------------
def _sq_sums_kernel(xhat_ref, tgt_ref, out_ref, acc_sq_ref, acc_sqc_ref):
    """Accumulates (8, L) partial sums of (x-t)^2 and (clip(x,0,1)-t)^2."""
    i = pl.program_id(1)  # inner (reduction) axis

    @pl.when(i == 0)
    def _():
        acc_sq_ref[...] = jnp.zeros_like(acc_sq_ref)
        acc_sqc_ref[...] = jnp.zeros_like(acc_sqc_ref)

    x = xhat_ref[...].astype(jnp.float32)
    t = tgt_ref[...].astype(jnp.float32)
    d = x - t
    dc = jnp.clip(x, 0.0, 1.0) - t
    br, L = d.shape  # static
    # (br, L) -> (br//8, 8, L).sum(0): plain vreg-wise VPU adds, no masked
    # sublane-slice RMW and no per-step cross-lane reduction.
    acc_sq_ref[...] = acc_sq_ref[...] + jnp.sum(
        (d * d).reshape(br // 8, 8, L), axis=0)
    acc_sqc_ref[...] = acc_sqc_ref[...] + jnp.sum(
        (dc * dc).reshape(br // 8, 8, L), axis=0)

    @pl.when(i == pl.num_programs(1) - 1)
    def _():
        out_ref[0:8, :] = acc_sq_ref[...]
        out_ref[8:16, :] = acc_sqc_ref[...]


def _log_sum_kernel(lik_ref, out_ref, acc_ref):
    """Accumulates (8, L) partial sums of log(likelihoods)."""
    i = pl.program_id(1)

    @pl.when(i == 0)
    def _():
        acc_ref[...] = jnp.zeros_like(acc_ref)

    lg = jnp.log(lik_ref[...].astype(jnp.float32))
    br, L = lg.shape  # static
    acc_ref[...] = acc_ref[...] + jnp.sum(lg.reshape(br // 8, 8, L), axis=0)

    @pl.when(i == pl.num_programs(1) - 1)
    def _():
        out_ref[...] = acc_ref[...]


# ---------------------------------------------------------------------------
# Wrappers
# ---------------------------------------------------------------------------
def _sq_sums(x_hat, target):
    """Returns (sum((x-t)^2), sum((clip(x,0,1)-t)^2)) over all elements."""
    n = x_hat.size
    rows_padded, br = _slab_geometry(n)
    n_padded = rows_padded * _LANES
    blocks_per_core = rows_padded // (2 * br)
    L = _LANES

    # Neutral padding: 0.0 for BOTH x_hat and target -> padded diffs are 0.
    x2 = _build_slab([x_hat.reshape(-1)], n_padded, 0.0,
                     x_hat.dtype).reshape(rows_padded, L)
    t2 = _build_slab([target.reshape(-1)], n_padded, 0.0,
                     target.dtype).reshape(rows_padded, L)

    partial = pl.pallas_call(
        _sq_sums_kernel,
        out_shape=jax.ShapeDtypeStruct((2, 16, L), jnp.float32),
        grid_spec=pltpu.PrefetchScalarGridSpec(
            num_scalar_prefetch=0,
            grid=(2, blocks_per_core),
            in_specs=[
                pl.BlockSpec((br, L), lambda c, i: (c * blocks_per_core + i, 0)),
                pl.BlockSpec((br, L), lambda c, i: (c * blocks_per_core + i, 0)),
            ],
            out_specs=pl.BlockSpec((None, 16, L), lambda c, i: (c, 0, 0)),
            scratch_shapes=[pltpu.VMEM((8, L), jnp.float32),
                            pltpu.VMEM((8, L), jnp.float32)],
        ),
        compiler_params=pltpu.CompilerParams(
            dimension_semantics=("parallel", "arbitrary"),
            vmem_limit_bytes=_VMEM_LIMIT_BYTES),
    )(x2, t2)

    sum_sq = jnp.sum(partial[:, 0:8, :])
    sum_sq_clamped = jnp.sum(partial[:, 8:16, :])
    return sum_sq, sum_sq_clamped


def _log_sum_fused(likelihood_list):
    """Sum of log(likelihoods) over ALL likelihood tensors in ONE pallas_call."""
    dtype = jnp.result_type(*[l.dtype for l in likelihood_list])
    flats = [l.reshape(-1) for l in likelihood_list]
    n = sum(int(f.shape[0]) for f in flats)

    rows_padded, br = _slab_geometry(n)
    n_padded = rows_padded * _LANES
    blocks_per_core = rows_padded // (2 * br)
    L = _LANES

    # Neutral padding with 1.0 -> log(1) = 0.  Single concatenate builds the
    # whole slab (tensors + pad) in one materialized copy.
    l2 = _build_slab(flats, n_padded, 1.0, dtype).reshape(rows_padded, L)

    partial = pl.pallas_call(
        _log_sum_kernel,
        out_shape=jax.ShapeDtypeStruct((2, 8, L), jnp.float32),
        grid_spec=pltpu.PrefetchScalarGridSpec(
            num_scalar_prefetch=0,
            grid=(2, blocks_per_core),
            in_specs=[
                pl.BlockSpec((br, L), lambda c, i: (c * blocks_per_core + i, 0)),
            ],
            out_specs=pl.BlockSpec((None, 8, L), lambda c, i: (c, 0, 0)),
            scratch_shapes=[pltpu.VMEM((8, L), jnp.float32)],
        ),
        compiler_params=pltpu.CompilerParams(
            dimension_semantics=("parallel", "arbitrary"),
            vmem_limit_bytes=_VMEM_LIMIT_BYTES),
    )(l2)

    return jnp.sum(partial)


def rate_distortion_loss(output, target, lmbda=0.01):
    """JAX/Pallas equivalent of RateDistortionLoss.forward."""
    x_hat = output["x_hat"]
    N, C, H, W = target.shape
    num_pixels = N * H * W
    n_elem = N * C * H * W

    sum_sq, sum_sq_clamped = _sq_sums(x_hat, target)
    mse_loss = sum_sq / n_elem
    mse_clamped = sum_sq_clamped / n_elem

    likelihood_list = list(output["likelihoods"].values())
    if likelihood_list:
        bpp_loss = _log_sum_fused(likelihood_list) / (-math.log(2) * num_pixels)
    else:
        bpp_loss = jnp.float32(0.0)

    rdloss = lmbda * (255 ** 2) * mse_loss + bpp_loss
    psnr = jnp.where(mse_clamped == 0,
                     jnp.float32(100.0),
                     10.0 * jnp.log10(1.0 / mse_clamped))
    return {"bpp_loss": bpp_loss, "mse_loss": mse_loss,
            "rdloss": rdloss, "psnr": psnr}


def _reference(output, target, lmbda=0.01):
    """Pure-JAX reference for sanity checking."""
    N, C, H, W = target.shape
    num_pixels = N * H * W
    bpp = sum(jnp.sum(jnp.log(l)) / (-math.log(2) * num_pixels)
              for l in output["likelihoods"].values())
    mse = jnp.mean((output["x_hat"] - target) ** 2)
    rd = lmbda * 255 ** 2 * mse + bpp
    msec = jnp.mean((jnp.clip(output["x_hat"], 0.0, 1.0) - target) ** 2)
    psnr = jnp.where(msec == 0, jnp.float32(100.0), 10.0 * jnp.log10(1.0 / msec))
    return {"bpp_loss": bpp, "mse_loss": mse, "rdloss": rd, "psnr": psnr}


if __name__ == "__main__":
    key = jax.random.PRNGKey(0)
    k1, k2, k3, k4 = jax.random.split(key, 4)

    N, C, H, W = 2, 3, 16, 16
    target = jax.random.uniform(k1, (N, C, H, W), dtype=jnp.float32)
    x_hat = jax.nn.sigmoid(jax.random.normal(k2, (N, C, H, W), dtype=jnp.float32))
    likelihoods = {
        "y": jax.random.uniform(k3, (N, 8, H // 4, W // 4), jnp.float32,
                                minval=1e-3, maxval=1.0),
        "z": jax.random.uniform(k4, (N, 8, H // 8, W // 8), jnp.float32,
                                minval=1e-3, maxval=1.0),
    }
    output = {"x_hat": x_hat, "likelihoods": likelihoods}

    fn = jax.jit(functools.partial(rate_distortion_loss, lmbda=0.01))
    out = fn(output, target)
    out = jax.tree_util.tree_map(jax.block_until_ready, out)

    ref = _reference(output, target, lmbda=0.01)
    for k in ("bpp_loss", "mse_loss", "rdloss", "psnr"):
        np.testing.assert_allclose(np.asarray(out[k]), np.asarray(ref[k]),
                                   rtol=1e-4, atol=1e-5)

    print("KERNEL_OK")
</pallas_src>

<mosaic_0001>
module attributes {stable_mosaic.version = 11 : i64} {
  func.func @_sq_sums_kernel(%arg0: i32, %arg1: i32, %arg2: memref<8x512xf32, #tpu.memory_space<vmem>>, %arg3: memref<8x512xf32, #tpu.memory_space<vmem>>, %arg4: memref<1x16x512xf32, #tpu.memory_space<vmem>>, %arg5: memref<8x512xf32, #tpu.memory_space<vmem>>, %arg6: memref<8x512xf32, #tpu.memory_space<vmem>>) attributes {dimension_semantics = [#tpu.dimension_semantics<parallel>, #tpu.dimension_semantics<arbitrary>], iteration_bounds = array<i64: 2, 1>, scalar_prefetch = 0 : i64, scratch_operands = 2 : i64, tpu.core_type = #tpu.core_type<tc>, window_params = [{transform_indices = @transform_0, window_bounds = array<i64: 8, 512>}, {transform_indices = @transform_1, window_bounds = array<i64: 8, 512>}, {transform_indices = @transform_2, window_bounds = array<i64: 1, 16, 512>}]} {
    %c0_i32 = arith.constant 0 : i32
    %0 = arith.cmpi eq, %arg1, %c0_i32 : i32
    %1 = arith.extui %0 : i1 to i32
    %c0_i32_0 = arith.constant 0 : i32
    %2 = arith.cmpi ne, %1, %c0_i32_0 : i32
    scf.if %2 {
      %cst_17 = arith.constant 0.000000e+00 : f32
      %26 = vector.broadcast %cst_17 : f32 to vector<8x512xf32>
      %c0_18 = arith.constant 0 : index
      %c0_19 = arith.constant 0 : index
      %27 = vector.load %arg5[%c0_18, %c0_19] : memref<8x512xf32, #tpu.memory_space<vmem>>, vector<8x512xf32>
      tpu.vector_store %arg5[%c0_18, %c0_19], %26 {strides = array<i32>} : memref<8x512xf32, #tpu.memory_space<vmem>>, vector<8x512xf32>,
      %cst_20 = arith.constant 0.000000e+00 : f32
      %28 = vector.broadcast %cst_20 : f32 to vector<8x512xf32>
      %c0_21 = arith.constant 0 : index
      %c0_22 = arith.constant 0 : index
      %29 = vector.load %arg6[%c0_21, %c0_22] : memref<8x512xf32, #tpu.memory_space<vmem>>, vector<8x512xf32>
      tpu.vector_store %arg6[%c0_21, %c0_22], %28 {strides = array<i32>} : memref<8x512xf32, #tpu.memory_space<vmem>>, vector<8x512xf32>,
    } else {
    }
    %c0 = arith.constant 0 : index
    %c0_1 = arith.constant 0 : index
    %3 = vector.load %arg2[%c0, %c0_1] : memref<8x512xf32, #tpu.memory_space<vmem>>, vector<8x512xf32>
    %c0_2 = arith.constant 0 : index
    %c0_3 = arith.constant 0 : index
    %4 = vector.load %arg3[%c0_2, %c0_3] : memref<8x512xf32, #tpu.memory_space<vmem>>, vector<8x512xf32>
    %5 = arith.subf %3, %4 : vector<8x512xf32>
    %cst = arith.constant 0.000000e+00 : f32
    %cst_4 = arith.constant 1.000000e+00 : f32
    %6 = vector.broadcast %cst : f32 to vector<8x512xf32>
    %7 = arith.maximumf %6, %3 : vector<8x512xf32>
    %8 = vector.broadcast %cst_4 : f32 to vector<8x512xf32>
    %9 = arith.minimumf %8, %7 : vector<8x512xf32>
    %10 = arith.subf %9, %4 : vector<8x512xf32>
    %c0_5 = arith.constant 0 : index
    %c0_6 = arith.constant 0 : index
    %11 = vector.load %arg5[%c0_5, %c0_6] : memref<8x512xf32, #tpu.memory_space<vmem>>, vector<8x512xf32>
    %12 = arith.mulf %5, %5 : vector<8x512xf32>
    %13 = vector.shape_cast %12 : vector<8x512xf32> to vector<1x8x512xf32>
    %cst_7 = arith.constant dense<0.000000e+00> : vector<8x512xf32>
    %14 = vector.multi_reduction <add>, %13, %cst_7 [0] : vector<1x8x512xf32> to vector<8x512xf32>
    %15 = arith.addf %11, %14 : vector<8x512xf32>
    %c0_8 = arith.constant 0 : index
    %c0_9 = arith.constant 0 : index
    %16 = vector.load %arg5[%c0_8, %c0_9] : memref<8x512xf32, #tpu.memory_space<vmem>>, vector<8x512xf32>
    tpu.vector_store %arg5[%c0_8, %c0_9], %15 {strides = array<i32>} : memref<8x512xf32, #tpu.memory_space<vmem>>, vector<8x512xf32>,
    %c0_10 = arith.constant 0 : index
    %c0_11 = arith.constant 0 : index
    %17 = vector.load %arg6[%c0_10, %c0_11] : memref<8x512xf32, #tpu.memory_space<vmem>>, vector<8x512xf32>
    %18 = arith.mulf %10, %10 : vector<8x512xf32>
    %19 = vector.shape_cast %18 : vector<8x512xf32> to vector<1x8x512xf32>
    %cst_12 = arith.constant dense<0.000000e+00> : vector<8x512xf32>
    %20 = vector.multi_reduction <add>, %19, %cst_12 [0] : vector<1x8x512xf32> to vector<8x512xf32>
    %21 = arith.addf %17, %20 : vector<8x512xf32>
    %c0_13 = arith.constant 0 : index
    %c0_14 = arith.constant 0 : index
    %22 = vector.load %arg6[%c0_13, %c0_14] : memref<8x512xf32, #tpu.memory_space<vmem>>, vector<8x512xf32>
    tpu.vector_store %arg6[%c0_13, %c0_14], %21 {strides = array<i32>} : memref<8x512xf32, #tpu.memory_space<vmem>>, vector<8x512xf32>,
    %c0_i32_15 = arith.constant 0 : i32
    %23 = arith.cmpi eq, %arg1, %c0_i32_15 : i32
    %24 = arith.extui %23 : i1 to i32
    %c0_i32_16 = arith.constant 0 : i32
    %25 = arith.cmpi ne, %24, %c0_i32_16 : i32
    scf.if %25 {
      %c0_17 = arith.constant 0 : index
      %c0_18 = arith.constant 0 : index
      %26 = vector.load %arg5[%c0_17, %c0_18] : memref<8x512xf32, #tpu.memory_space<vmem>>, vector<8x512xf32>
      %c0_19 = arith.constant 0 : index
      %c0_20 = arith.constant 0 : index
      %c0_21 = arith.constant 0 : index
      %27 = vector.load %arg4[%c0_19, %c0_20, %c0_21] : memref<1x16x512xf32, #tpu.memory_space<vmem>>, vector<1x8x512xf32>
      %28 = vector.shape_cast %27 : vector<1x8x512xf32> to vector<8x512xf32>
      %29 = vector.shape_cast %26 : vector<8x512xf32> to vector<1x8x512xf32>
      tpu.vector_store %arg4[%c0_19, %c0_20, %c0_21], %29 {strides = array<i32>} : memref<1x16x512xf32, #tpu.memory_space<vmem>>, vector<1x8x512xf32>,
      %c0_22 = arith.constant 0 : index
      %c0_23 = arith.constant 0 : index
      %30 = vector.load %arg6[%c0_22, %c0_23] : memref<8x512xf32, #tpu.memory_space<vmem>>, vector<8x512xf32>
      %c0_24 = arith.constant 0 : index
      %c8 = arith.constant 8 : index
      %c0_25 = arith.constant 0 : index
      %31 = vector.load %arg4[%c0_24, %c8, %c0_25] : memref<1x16x512xf32, #tpu.memory_space<vmem>>, vector<1x8x512xf32>
      %32 = vector.shape_cast %31 : vector<1x8x512xf32> to vector<8x512xf32>
      %33 = vector.shape_cast %30 : vector<8x512xf32> to vector<1x8x512xf32>
      tpu.vector_store %arg4[%c0_24, %c8, %c0_25], %33 {strides = array<i32>} : memref<1x16x512xf32, #tpu.memory_space<vmem>>, vector<1x8x512xf32>,
    } else {
    }
    return
  }
  func.func @transform_0(%arg0: i32, %arg1: i32) -> (i32, i32) {
    %c1_i32 = arith.constant 1 : i32
    %0 = arith.muli %arg0, %c1_i32 : i32
    %1 = arith.addi %0, %arg1 : i32
    %c0_i32 = arith.constant 0 : i32
    %c0_i32_0 = arith.constant 0 : i32
    return %1, %c0_i32 : i32, i32
  }
  func.func @transform_1(%arg0: i32, %arg1: i32) -> (i32, i32) {
    %c1_i32 = arith.constant 1 : i32
    %0 = arith.muli %arg0, %c1_i32 : i32
    %1 = arith.addi %0, %arg1 : i32
    %c0_i32 = arith.constant 0 : i32
    %c0_i32_0 = arith.constant 0 : i32
    return %1, %c0_i32 : i32, i32
  }
  func.func @transform_2(%arg0: i32, %arg1: i32) -> (i32, i32, i32) {
    %c0_i32 = arith.constant 0 : i32
    %c0_i32_0 = arith.constant 0 : i32
    %c0_i32_1 = arith.constant 0 : i32
    return %arg0, %c0_i32, %c0_i32_0 : i32, i32, i32
  }
}

module attributes {stable_mosaic.version = 11 : i64} {
  func.func @_log_sum_kernel(%arg0: i32, %arg1: i32, %arg2: memref<8x512xf32, #tpu.memory_space<vmem>>, %arg3: memref<1x8x512xf32, #tpu.memory_space<vmem>>, %arg4: memref<8x512xf32, #tpu.memory_space<vmem>>) attributes {dimension_semantics = [#tpu.dimension_semantics<parallel>, #tpu.dimension_semantics<arbitrary>], iteration_bounds = array<i64: 2, 1>, scalar_prefetch = 0 : i64, scratch_operands = 1 : i64, tpu.core_type = #tpu.core_type<tc>, window_params = [{transform_indices = @transform_0, window_bounds = array<i64: 8, 512>}, {transform_indices = @transform_1, window_bounds = array<i64: 1, 8, 512>}]} {
    %c0_i32 = arith.constant 0 : i32
    %0 = arith.cmpi eq, %arg1, %c0_i32 : i32
    %1 = arith.extui %0 : i1 to i32
    %c0_i32_0 = arith.constant 0 : i32
    %2 = arith.cmpi ne, %1, %c0_i32_0 : i32
    scf.if %2 {
      %cst_8 = arith.constant 0.000000e+00 : f32
      %13 = vector.broadcast %cst_8 : f32 to vector<8x512xf32>
      %c0_9 = arith.constant 0 : index
      %c0_10 = arith.constant 0 : index
      %14 = vector.load %arg4[%c0_9, %c0_10] : memref<8x512xf32, #tpu.memory_space<vmem>>, vector<8x512xf32>
      tpu.vector_store %arg4[%c0_9, %c0_10], %13 {strides = array<i32>} : memref<8x512xf32, #tpu.memory_space<vmem>>, vector<8x512xf32>,
    } else {
    }
    %c0 = arith.constant 0 : index
    %c0_1 = arith.constant 0 : index
    %3 = vector.load %arg2[%c0, %c0_1] : memref<8x512xf32, #tpu.memory_space<vmem>>, vector<8x512xf32>
    %4 = math.log %3 : vector<8x512xf32>
    %c0_2 = arith.constant 0 : index
    %c0_3 = arith.constant 0 : index
    %5 = vector.load %arg4[%c0_2, %c0_3] : memref<8x512xf32, #tpu.memory_space<vmem>>, vector<8x512xf32>
    %6 = vector.shape_cast %4 : vector<8x512xf32> to vector<1x8x512xf32>
    %cst = arith.constant dense<0.000000e+00> : vector<8x512xf32>
    %7 = vector.multi_reduction <add>, %6, %cst [0] : vector<1x8x512xf32> to vector<8x512xf32>
    %8 = arith.addf %5, %7 : vector<8x512xf32>
    %c0_4 = arith.constant 0 : index
    %c0_5 = arith.constant 0 : index
    %9 = vector.load %arg4[%c0_4, %c0_5] : memref<8x512xf32, #tpu.memory_space<vmem>>, vector<8x512xf32>
    tpu.vector_store %arg4[%c0_4, %c0_5], %8 {strides = array<i32>} : memref<8x512xf32, #tpu.memory_space<vmem>>, vector<8x512xf32>,
    %c0_i32_6 = arith.constant 0 : i32
    %10 = arith.cmpi eq, %arg1, %c0_i32_6 : i32
    %11 = arith.extui %10 : i1 to i32
    %c0_i32_7 = arith.constant 0 : i32
    %12 = arith.cmpi ne, %11, %c0_i32_7 : i32
    scf.if %12 {
      %c0_8 = arith.constant 0 : index
      %c0_9 = arith.constant 0 : index
      %13 = vector.load %arg4[%c0_8, %c0_9] : memref<8x512xf32, #tpu.memory_space<vmem>>, vector<8x512xf32>
      %c0_10 = arith.constant 0 : index
      %c0_11 = arith.constant 0 : index
      %c0_12 = arith.constant 0 : index
      %14 = vector.load %arg3[%c0_10, %c0_11, %c0_12] : memref<1x8x512xf32, #tpu.memory_space<vmem>>, vector<1x8x512xf32>
      %15 = vector.shape_cast %14 : vector<1x8x512xf32> to vector<8x512xf32>
      %16 = vector.shape_cast %13 : vector<8x512xf32> to vector<1x8x512xf32>
      tpu.vector_store %arg3[%c0_10, %c0_11, %c0_12], %16 {strides = array<i32>} : memref<1x8x512xf32, #tpu.memory_space<vmem>>, vector<1x8x512xf32>,
    } else {
    }
    return
  }
  func.func @transform_0(%arg0: i32, %arg1: i32) -> (i32, i32) {
    %c1_i32 = arith.constant 1 : i32
    %0 = arith.muli %arg0, %c1_i32 : i32
    %1 = arith.addi %0, %arg1 : i32
    %c0_i32 = arith.constant 0 : i32
    %c0_i32_0 = arith.constant 0 : i32
    return %1, %c0_i32 : i32, i32
  }
  func.func @transform_1(%arg0: i32, %arg1: i32) -> (i32, i32, i32) {
    %c0_i32 = arith.constant 0 : i32
    %c0_i32_0 = arith.constant 0 : i32
    %c0_i32_1 = arith.constant 0 : i32
    return %arg0, %c0_i32, %c0_i32_0 : i32, i32, i32
  }
}

</mosaic_0001>

<bundles_post_ra>
// kernel: rate_distortion_loss.3
= control target key start
LH: loop header
LB: loop body
LE: loop exit
PB: predicated region body
PF: predicated region fallthrough
CT: control target
= control target key end

     0   :  { %s325_s6 = smov 0   ;;  %s327_s7 = smov 0   ;;  %s358_s0 = inlined_call_operand.vmem [shape: f32[16,512], index: 0, kind: input, shape index: {}]   ;;  %s359_s1 = inlined_call_operand.vmem [shape: f32[2,8,512], index: 1, kind: output, shape index: {}]  }
   0x1   :  { %s329_s8 = smov 0  }
   0x2 LB: > { %s23_s9 = sadd.s32 1, %s309_s7  ;;  %p250_p0 = scmp.ge.s32.totalorder %s313_s8, 1  ;;  %s313_s8 = sphi %s329_s8, %s11_s8   ;;  %s309_s7 = sphi %s327_s7, %s361_s7   ;;  %s305_s6 = sphi %s325_s6, %s360_s6  }
   0x3   : > { %p25_p1 = scmp.ge.s32.totalorder %s23_s9, 2  ;;  %p103_p2 = scmp.lt.s32.totalorder %s313_s8, 3 }
   0x5   : > { %s363_s9 = smov (%p25_p1, %s23_s9), 0  ;;  %p104_p3 = pnand %p250_p0, %p103_p2 }
   0x6   : > { %p125_p4 = scmp.lt.s32.totalorder (!%p104_p3), %s305_s6, 1 }
   0x7   : > { %107 = sbr.rel (%p104_p3) target bundleno = 29 (0x1d), region = 24 }
   0xc   : > { %s365_s6 = smov (!%p125_p4, %s305_s6), 1 }
   0xd   : > { %s257_s10 = sshll.u32 %s365_s6, 5 }
   0xe   : > { %s129_s13 = scalar_lea.vmem %s358_s0, %s257_s10  ;;  %s135_s16 = scalar_lea.vmem %s359_s1, %s257_s10 }
   0xf   : > { %v144_v0 = vld [vmem:[%s129_s13] sm:$0xff]  ;;  %v145_v1 = vld [vmem:[%s129_s13 + $0x8] sm:$0xff]  ;;  %v146_v2 = vld [vmem:[%s129_s13 + $0x10] sm:$0xff] }
  0x10   : > { %283 = vlog2.f32 %v144_v0  ;;  %v147_v3 = vld [vmem:[%s129_s13 + $0x18] sm:$0xff] }
  0x11   : > { %285 = vlog2.f32 %v145_v1 }
  0x12   : > { %287 = vlog2.f32 %v146_v2 }
  0x13   : > { %289 = vlog2.f32 %v147_v3 }
  0x16   : > { %v284_v4 = vpop.eup %283 }
  0x17   : > { %v286_v5 = vpop.eup %285  ;;  %v149_v6 = vmul.f32 0.6931472, %v284_v4 }
  0x18   : > { %v288_v7 = vpop.eup %287  ;;  %v151_v8 = vmul.f32 0.6931472, %v286_v5 }
  0x19   : > { %v290_v9 = vpop.eup %289  ;;  %179 = vst [vmem:[%s135_s16] sm:$0xff] %v149_v6  ;;  %v153_v10 = vmul.f32 0.6931472, %v288_v7 }
  0x1a   : > { %180 = vst [vmem:[%s135_s16 + $0x8] sm:$0xff] %v151_v8  ;;  %v155_v11 = vmul.f32 0.6931472, %v290_v9 }
  0x1b   : > { %181 = vst [vmem:[%s135_s16 + $0x10] sm:$0xff] %v153_v10 }
  0x1c   : > { %182 = vst [vmem:[%s135_s16 + $0x18] sm:$0xff] %v155_v11 }
  0x1d PF: > { %s11_s8 = sadd.s32 1, %s313_s8   ;;  %s360_s6 = smov %s309_s7 }
  0x1e   : > { %p8_p5 = scmp.ge.s32.totalorder %s11_s8, 4   ;;  %s361_s7 = smov %s363_s9 }
  0x20   :  { %10 = sbr.rel (!%p8_p5) target bundleno = 2 (0x2), region = 62 }

// kernel: rate_distortion_loss.2
= control target key start
LH: loop header
LB: loop body
LE: loop exit
PB: predicated region body
PF: predicated region fallthrough
CT: control target
= control target key end

     0   :  { %s439_s9 = smov 0   ;;  %s441_s10 = smov 0   ;;  %s485_s0 = inlined_call_operand.vmem [shape: f32[16,512], index: 0, kind: input, shape index: {}]   ;;  %s486_s1 = inlined_call_operand.vmem [shape: f32[16,512], index: 1, kind: input, shape index: {}]   ;;  %s487_s2 = inlined_call_operand.vmem [shape: f32[2,16,512], index: 2, kind: output, shape index: {}]  }
   0x1   :  { %s443_s11 = smov 0  }
   0x2 LB: > { %s24_s12 = sadd.s32 1, %s418_s10  ;;  %p364_p0 = scmp.ge.s32.totalorder %s422_s11, 1  ;;  %s422_s11 = sphi %s443_s11, %s12_s11   ;;  %s418_s10 = sphi %s441_s10, %s489_s10   ;;  %s414_s9 = sphi %s439_s9, %s488_s9  }
   0x3   : > { %p26_p1 = scmp.ge.s32.totalorder %s24_s12, 2  ;;  %p142_p2 = scmp.lt.s32.totalorder %s422_s11, 3 }
   0x5   : > { %s491_s12 = smov (%p26_p1, %s24_s12), 0  ;;  %p143_p3 = pnand %p364_p0, %p142_p2 }
   0x6   : > { %p172_p4 = scmp.lt.s32.totalorder (!%p143_p3), %s414_s9, 1 }
   0x7   : > { %146 = sbr.rel (%p143_p3) target bundleno = 29 (0x1d), region = 28 }
   0xc   : > { %s493_s9 = smov (!%p172_p4, %s414_s9), 1 }
   0xd   : > { %s373_s13 = sshll.u32 %s493_s9, 5  ;;  %s375_s14 = sshll.u32 %s493_s9, 6 }
   0xe   : > { %s176_s17 = scalar_lea.vmem %s485_s0, %s373_s13  ;;  %s183_s20 = scalar_lea.vmem %s486_s1, %s373_s13 }
   0xf   : > { %v202_v0 = vld [vmem:[%s176_s17] sm:$0xff]  ;;  %v203_v2 = vld [vmem:[%s176_s17 + $0x8] sm:$0xff]  ;;  %v204_v7 = vld [vmem:[%s176_s17 + $0x10] sm:$0xff]  ;;  %s466_s23 = scalar_lea.vmem %s487_s2, %s375_s14 }
  0x10   : > { %v206_v1 = vld [vmem:[%s183_s20] sm:$0xff]  ;;  %v214_v4 = vmax.f32 %v202_v0, 0.0  ;;  %v207_v5 = vld [vmem:[%s183_s20 + $0x8] sm:$0xff]  ;;  %v215_v6 = vmax.f32 %v203_v2, 0.0  ;;  %v208_v8 = vld [vmem:[%s183_s20 + $0x10] sm:$0xff]  ;;  %v216_v11 = vmax.f32 %v204_v7, 0.0 }
  0x11   : > { %v210_v3 = vsub.f32 %v202_v0, %v206_v1  ;;  %v211_v9 = vsub.f32 %v203_v2, %v207_v5  ;;  %v212_v10 = vsub.f32 %v204_v7, %v208_v8  ;;  %v205_v12 = vld [vmem:[%s176_s17 + $0x18] sm:$0xff] }
  0x12   : > { %v209_v13 = vld [vmem:[%s183_s20 + $0x18] sm:$0xff]  ;;  %v217_v16 = vmax.f32 %v205_v12, 0.0  ;;  %v218_v17 = vmin.f32 %v214_v4, 1.0  ;;  %v219_v20 = vmin.f32 %v215_v6, 1.0  ;;  %v220_v21 = vmin.f32 %v216_v11, 1.0 }
  0x13   : > { %v230_v14 = vmul.f32 %v210_v3, %v210_v3  ;;  %v213_v15 = vsub.f32 %v205_v12, %v209_v13  ;;  %v231_v18 = vmul.f32 %v211_v9, %v211_v9  ;;  %v232_v19 = vmul.f32 %v212_v10, %v212_v10 }
  0x14   : > { %v222_v23 = vsub.f32 %v218_v17, %v206_v1  ;;  %v221_v24 = vmin.f32 %v217_v16, 1.0  ;;  %v223_v25 = vsub.f32 %v219_v20, %v207_v5  ;;  %v224_v26 = vsub.f32 %v220_v21, %v208_v8 }
  0x15   : > { %273 = vst [vmem:[%s466_s23] sm:$0xff] %v230_v14  ;;  %v233_v22 = vmul.f32 %v213_v15, %v213_v15 }
  0x16   : > { %274 = vst [vmem:[%s466_s23 + $0x8] sm:$0xff] %v231_v18  ;;  %v250_v27 = vmul.f32 %v222_v23, %v222_v23  ;;  %v225_v28 = vsub.f32 %v221_v24, %v209_v13  ;;  %v251_v29 = vmul.f32 %v223_v25, %v223_v25  ;;  %v252_v30 = vmul.f32 %v224_v26, %v224_v26 }
  0x17   : > { %275 = vst [vmem:[%s466_s23 + $0x10] sm:$0xff] %v232_v19 }
  0x18   : > { %276 = vst [vmem:[%s466_s23 + $0x18] sm:$0xff] %v233_v22  ;;  %v253_v31 = vmul.f32 %v225_v28, %v225_v28 }
  0x19   : > { %281 = vst [vmem:[%s466_s23 + $0x20] sm:$0xff] %v250_v27 }
  0x1a   : > { %282 = vst [vmem:[%s466_s23 + $0x28] sm:$0xff] %v251_v29 }
  0x1b   : > { %283 = vst [vmem:[%s466_s23 + $0x30] sm:$0xff] %v252_v30 }
  0x1c   : > { %284 = vst [vmem:[%s466_s23 + $0x38] sm:$0xff] %v253_v31 }
  0x1d PF: > { %s12_s11 = sadd.s32 1, %s422_s11   ;;  %s488_s9 = smov %s418_s10 }
  0x1e   : > { %p9_p5 = scmp.ge.s32.totalorder %s12_s11, 4   ;;  %s489_s10 = smov %s491_s12 }
  0x20   :  { %11 = sbr.rel (!%p9_p5) target bundleno = 2 (0x2), region = 69 }

</bundles_post_ra>
